<compile_context>
chip_gen: v6e
topology: v6e:2x2x1
jax: 0.10.0
libtpu: 0.0.40
codegen_flags: <defaults>
</compile_context>

<pallas_src>
import jax
import jax.numpy as jnp
from jax.experimental import pallas as pl
from jax.experimental.pallas import tpu as pltpu

C_IN = 1
C_OUT = 64


def conv1x1_tanh_kernel(x_ref, w_ref, b_ref, o_ref):
    # x_ref: (TB, 1, TL)    -- lane-dense input slab, single input channel
    # w_ref: (1, C_OUT, 1)  -- lane-broadcast weight column (resident)
    # b_ref: (1, C_OUT, 1)  -- lane-broadcast bias column   (resident)
    # o_ref: (TB, C_OUT, TL) -- lane-dense NCL output block
    y = x_ref[...] * w_ref[...] + b_ref[...]        # VPU mul-add in f32
    o_ref[...] = jnp.tanh(y.astype(o_ref.dtype))    # EUP tanh at output precision


def _choose_tiles(N, L, elem_bytes, target_bytes):
    """Pick (TB, TL) so the output block (TB, C_OUT, TL) is ~target_bytes."""
    row_bytes = C_OUT * elem_bytes
    if L % 128 == 0:
        max_tl = max(128, (target_bytes // row_bytes) // 128 * 128)
        TL = min(L, max_tl)
    else:
        # L not a multiple of 128: a full-L block (block dim == array dim) is
        # always legal; otherwise use a 128-multiple tile and let Pallas clip
        # the ragged last block on writeback.
        if L < 128 or L * row_bytes <= target_bytes:
            TL = L
        else:
            TL = max(128, (target_bytes // row_bytes) // 128 * 128)
    TB = int(max(1, min(N, target_bytes // (TL * row_bytes))))

    # Keep >= 2 grid steps for non-trivial problems so both v7x TensorCores
    # get work (negligible for tiny demos).
    if N * L * row_bytes > (2 << 20) and pl.cdiv(N, TB) * pl.cdiv(L, TL) == 1:
        if N >= 2:
            TB = pl.cdiv(N, 2)
        elif L % 128 == 0 and TL >= 256:
            TL = max(128, (TL // 2) // 128 * 128)
    return TB, TL


def model_tanh_forward(x_ncl, weight, bias, *, out_dtype=None,
                       vmem_block_bytes=4 * 1024 * 1024):
    """Forward of ModelTanh: tanh(Conv1d(1, 64, kernel_size=1)(x)).

    x_ncl: (N, 1, L); weight: (64, 1, 1); bias: (64,).  Returns (N, 64, L).
    """
    N, cin, L = x_ncl.shape
    assert cin == C_IN
    out_dtype = x_ncl.dtype if out_dtype is None else out_dtype

    TB, TL = _choose_tiles(N, L, jnp.dtype(out_dtype).itemsize, vmem_block_bytes)
    grid = (pl.cdiv(N, TB), pl.cdiv(L, TL))

    w3d = weight.reshape(1, C_OUT, 1).astype(x_ncl.dtype)
    b3d = bias.reshape(1, C_OUT, 1).astype(x_ncl.dtype)

    return pl.pallas_call(
        conv1x1_tanh_kernel,
        out_shape=jax.ShapeDtypeStruct((N, C_OUT, L), out_dtype),
        grid=grid,
        in_specs=[
            pl.BlockSpec((TB, C_IN, TL), lambda nb, lb: (nb, 0, lb)),
            pl.BlockSpec((1, C_OUT, 1), lambda nb, lb: (0, 0, 0)),
            pl.BlockSpec((1, C_OUT, 1), lambda nb, lb: (0, 0, 0)),
        ],
        out_specs=pl.BlockSpec((TB, C_OUT, TL), lambda nb, lb: (nb, 0, lb)),
        compiler_params=pltpu.CompilerParams(
            dimension_semantics=("parallel", "parallel")),
    )(x_ncl, w3d, b3d)


# TODO(synk): BatchNorm1d(x1) is evaluated in the PyTorch forward only for its
# running_mean/running_var side effect (x2 is unused by the return value); the
# returned tensor does not depend on it, so it is omitted here.


if __name__ == "__main__":
    key = jax.random.PRNGKey(0)
    kx, kw, kb = jax.random.split(key, 3)

    # Small shapes consistent with Conv1d(1, 64, kernel_size=1): input (N, 1, L)
    N, L = 2, 256
    x0 = jax.random.normal(kx, (N, C_IN, L), dtype=jnp.float32)

    # Deterministic PyTorch-style init: U(-sqrt(k), sqrt(k)), k = 1/(C_in*ksize) = 1
    weight = jax.random.uniform(kw, (C_OUT, C_IN, 1), dtype=jnp.float32,
                                minval=-1.0, maxval=1.0)
    bias = jax.random.uniform(kb, (C_OUT,), dtype=jnp.float32,
                              minval=-1.0, maxval=1.0)

    out = model_tanh_forward(x0, weight, bias)
    out = jax.block_until_ready(out)

    # Pure-JAX reference (conv1x1 + tanh in NCL layout)
    ref = jnp.tanh(x0 * weight.reshape(1, C_OUT, 1) + bias.reshape(1, C_OUT, 1))
    assert out.shape == (N, C_OUT, L), out.shape
    assert jnp.allclose(out, ref, atol=1e-6, rtol=1e-6)

    print("KERNEL_OK")
</pallas_src>

<mosaic_0001>
module attributes {stable_mosaic.version = 11 : i64} {
  func.func @conv1x1_tanh_kernel(%arg0: i32, %arg1: i32, %arg2: memref<2x1x256xf32, #tpu.memory_space<vmem>>, %arg3: memref<1x64x1xf32, #tpu.memory_space<vmem>>, %arg4: memref<1x64x1xf32, #tpu.memory_space<vmem>>, %arg5: memref<2x64x256xf32, #tpu.memory_space<vmem>>) attributes {dimension_semantics = [#tpu.dimension_semantics<parallel>, #tpu.dimension_semantics<parallel>], iteration_bounds = array<i64: 1, 1>, scalar_prefetch = 0 : i64, scratch_operands = 0 : i64, tpu.core_type = #tpu.core_type<tc>, window_params = [{transform_indices = @transform_0, window_bounds = array<i64: 2, 1, 256>}, {pipeline_mode = #tpu.pipeline_mode<synchronous>, transform_indices = @transform_1, window_bounds = array<i64: 1, 64, 1>}, {pipeline_mode = #tpu.pipeline_mode<synchronous>, transform_indices = @transform_2, window_bounds = array<i64: 1, 64, 1>}, {transform_indices = @transform_3, window_bounds = array<i64: 2, 64, 256>}]} {
    %c0 = arith.constant 0 : index
    %c0_0 = arith.constant 0 : index
    %c0_1 = arith.constant 0 : index
    %0 = vector.load %arg2[%c0, %c0_0, %c0_1] : memref<2x1x256xf32, #tpu.memory_space<vmem>>, vector<2x1x256xf32>
    %c0_2 = arith.constant 0 : index
    %c0_3 = arith.constant 0 : index
    %c0_4 = arith.constant 0 : index
    %1 = vector.load %arg3[%c0_2, %c0_3, %c0_4] : memref<1x64x1xf32, #tpu.memory_space<vmem>>, vector<1x64x1xf32>
    %2 = vector.broadcast %0 : vector<2x1x256xf32> to vector<2x64x256xf32>
    %3 = vector.broadcast %1 : vector<1x64x1xf32> to vector<2x64x256xf32>
    %4 = arith.mulf %2, %3 : vector<2x64x256xf32>
    %c0_5 = arith.constant 0 : index
    %c0_6 = arith.constant 0 : index
    %c0_7 = arith.constant 0 : index
    %5 = vector.load %arg4[%c0_5, %c0_6, %c0_7] : memref<1x64x1xf32, #tpu.memory_space<vmem>>, vector<1x64x1xf32>
    %6 = vector.broadcast %5 : vector<1x64x1xf32> to vector<2x64x256xf32>
    %7 = arith.addf %4, %6 : vector<2x64x256xf32>
    %8 = math.tanh %7 : vector<2x64x256xf32>
    %c0_8 = arith.constant 0 : index
    %c0_9 = arith.constant 0 : index
    %c0_10 = arith.constant 0 : index
    %9 = vector.load %arg5[%c0_8, %c0_9, %c0_10] : memref<2x64x256xf32, #tpu.memory_space<vmem>>, vector<2x64x256xf32>
    tpu.vector_store %arg5[%c0_8, %c0_9, %c0_10], %8 {strides = array<i32>} : memref<2x64x256xf32, #tpu.memory_space<vmem>>, vector<2x64x256xf32>,
    return
  }
  func.func @transform_0(%arg0: i32, %arg1: i32) -> (i32, i32, i32) {
    %c0_i32 = arith.constant 0 : i32
    %c0_i32_0 = arith.constant 0 : i32
    return %arg0, %c0_i32, %arg1 : i32, i32, i32
  }
  func.func @transform_1(%arg0: i32, %arg1: i32) -> (i32, i32, i32) {
    %c0_i32 = arith.constant 0 : i32
    %c0_i32_0 = arith.constant 0 : i32
    %c0_i32_1 = arith.constant 0 : i32
    %c0_i32_2 = arith.constant 0 : i32
    return %c0_i32, %c0_i32_0, %c0_i32_1 : i32, i32, i32
  }
  func.func @transform_2(%arg0: i32, %arg1: i32) -> (i32, i32, i32) {
    %c0_i32 = arith.constant 0 : i32
    %c0_i32_0 = arith.constant 0 : i32
    %c0_i32_1 = arith.constant 0 : i32
    %c0_i32_2 = arith.constant 0 : i32
    return %c0_i32, %c0_i32_0, %c0_i32_1 : i32, i32, i32
  }
  func.func @transform_3(%arg0: i32, %arg1: i32) -> (i32, i32, i32) {
    %c0_i32 = arith.constant 0 : i32
    %c0_i32_0 = arith.constant 0 : i32
    return %arg0, %c0_i32, %arg1 : i32, i32, i32
  }
}

</mosaic_0001>

<bundles_post_ra>
// kernel: tpu_custom_call.1
= control target key start
LH: loop header
LB: loop body
LE: loop exit
PB: predicated region body
PF: predicated region fallthrough
CT: control target
= control target key end

     0   :  { %v371_v2 = vmov 0   ;;  %s516_s0 = inlined_call_operand.vmem [shape: f32[2,1,256], index: 0, kind: input, shape index: {}]   ;;  %s517_s1 = inlined_call_operand.vmem [shape: f32[1,64,1], index: 1, kind: input, shape index: {}]   ;;  %s518_s2 = inlined_call_operand.vmem [shape: f32[1,64,1], index: 2, kind: input, shape index: {}]   ;;  %s519_s3 = inlined_call_operand.hbm [shape: f32[2,64,256], index: 3, kind: output, shape index: {}]  }
   0x1   :  { %v19_v0 = vld [vmem:[%s517_s1 + $0x10] sm:$0xff]  ;;  %v17_v1 = vld [vmem:[%s517_s1] sm:$0xff]  ;;  %284 = vset.pattern.permute.xlu1 %v371_v2  ;;  %283 = vset.pattern.permute.xlu0 %v371_v2  ;;  %v20_v3 = vld [vmem:[%s517_s1 + $0x18] sm:$0xff] }
   0x2   :  { %59 = vperm.xlu1 %284, %v19_v0   ;;  %49 = vperm.xlu0 %283, %v17_v1   ;;  %v18_v4 = vld [vmem:[%s517_s1 + $0x8] sm:$0xff] }
   0x6   :  { %64 = vperm.xlu1 %284, %v20_v3   ;;  %54 = vperm.xlu0 %283, %v18_v4  }
   0x7   :  { %8 = vsyncpa [#allocation3], 0  ;;  %v22_v5 = vld [vmem:[%s517_s1 + $0x28] sm:$0xff]  ;;  %v21_v6 = vld [vmem:[%s517_s1 + $0x20] sm:$0xff]  ;;  %v27_v19 = vlaneseq }
   0x8   :  { %v24_v7 = vld [vmem:[%s517_s1 + $0x38] sm:$0xff]  ;;  %v23_v8 = vld [vmem:[%s517_s1 + $0x30] sm:$0xff]  ;;  %v120_v9 = vld [vmem:[%s518_s2 + $0x8] sm:$0xff] }
   0x9   :  { %v119_v10 = vld [vmem:[%s518_s2] sm:$0xff]  ;;  %v122_v11 = vld [vmem:[%s518_s2 + $0x18] sm:$0xff]  ;;  %v121_v12 = vld [vmem:[%s518_s2 + $0x10] sm:$0xff]  ;;  %v28_v22 = vshrl.u32 %v27_v19, 7 }
   0xa   :  { %74 = vperm.xlu1 %284, %v22_v5   ;;  %69 = vperm.xlu0 %283, %v21_v6   ;;  %v124_v13 = vld [vmem:[%s518_s2 + $0x28] sm:$0xff]  ;;  %v123_v14 = vld [vmem:[%s518_s2 + $0x20] sm:$0xff]  ;;  %v126_v15 = vld [vmem:[%s518_s2 + $0x38] sm:$0xff] }
   0xb   :  { %v125_v16 = vld [vmem:[%s518_s2 + $0x30] sm:$0xff]  ;;  %v29_v25 = vsub.s32 0, %v28_v22  ;;  %v33_v26 = vsub.s32 1, %v28_v22  ;;  %v15_v27 = vld [vmem:[%s516_s0] sm:$0x3] }
   0xc   :  { %v16_v28 = vld [vmem:[%s516_s0 + $0x2] sm:$0x3]  ;;  %s372_s0 = smov [#allocation2]  }
   0xd   :  { %v457_v31 = vrot.slane %v15_v27, %v29_v25  ;;  %v459_v32 = vrot.slane %v15_v27, %v33_v26  ;;  %v461_v33 = vrot.slane %v16_v28, %v29_v25  ;;  %v463_v34 = vrot.slane %v16_v28, %v33_v26  ;;  %s268_s19 = sshll.u32 %s372_s0, 4  ;;  %s269_s19 = int_to_ptr.vmem [resolvable:$true] %s268_s19 }
   0xe   :  { %84 = vperm.xlu1 %284, %v24_v7   ;;  %79 = vperm.xlu0 %283, %v23_v8   ;;  %s349_s20 = scalar_lea.vmem %s269_s19, 4096  ;;  %p354_p1 = scmp.lt.s32.totalorder %s269_s19, %s269_s19 }
   0xf   :  { %p350_p0 = scmp.ne.s32.totalorder %s269_s19, %s349_s20  ;;  %p355_p2 = scmp.lt.s32.totalorder %s349_s20, %s349_s20 }
  0x11   :  { %p356_p3 = por %p355_p2, %p354_p1 }
  0x12   :  { %134 = vperm.xlu1 %284, %v120_v9   ;;  %129 = vperm.xlu0 %283, %v119_v10  }
  0x13   :  { %p357_p4 = pnand %p356_p3, %p350_p0 }
  0x16   :  { %144 = vperm.xlu1 %284, %v122_v11   ;;  %139 = vperm.xlu0 %283, %v121_v12  }
  0x1a   :  { %154 = vperm.xlu1 %284, %v124_v13   ;;  %149 = vperm.xlu0 %283, %v123_v14  }
  0x1e   :  { %164 = vperm.xlu1 %284, %v126_v15   ;;  %159 = vperm.xlu0 %283, %v125_v16  }
  0x7d   :  { %v60_v17 = vpop.permute.xlu1 %59  ;;  %v50_v18 = vpop.permute.xlu0 %49 }
  0x7e   :  { %v87_v41 = vmul.f32 %v50_v18, %v457_v31  ;;  %v88_v45 = vmul.f32 %v50_v18, %v459_v32  ;;  %v103_v47 = vmul.f32 %v50_v18, %v461_v33  ;;  %v104_v49 = vmul.f32 %v50_v18, %v463_v34 }
  0x7f   :  { %v91_v61 = vmul.f32 %v60_v17, %v457_v31  ;;  %v92_v63 = vmul.f32 %v60_v17, %v459_v32  ;;  %v107_v1 = vmul.f32 %v60_v17, %v461_v33  ;;  %v108_v3 = vmul.f32 %v60_v17, %v463_v34 }
  0x81   :  { %v65_v20 = vpop.permute.xlu1 %64  ;;  %v55_v21 = vpop.permute.xlu0 %54 }
  0x82   :  { %v89_v35 = vmul.f32 %v55_v21, %v457_v31  ;;  %v90_v36 = vmul.f32 %v55_v21, %v459_v32  ;;  %v105_v37 = vmul.f32 %v55_v21, %v461_v33  ;;  %v106_v38 = vmul.f32 %v55_v21, %v463_v34 }
  0x83   :  { %v93_v52 = vmul.f32 %v65_v20, %v457_v31  ;;  %v94_v54 = vmul.f32 %v65_v20, %v459_v32  ;;  %v109_v56 = vmul.f32 %v65_v20, %v461_v33  ;;  %v110_v58 = vmul.f32 %v65_v20, %v463_v34 }
  0x85   :  { %v443_v23 = vpop.permute.xlu1 %74  ;;  %v445_v24 = vpop.permute.xlu0 %69 }
  0x86   :  { %v97_v6 = vmul.f32 %v443_v23, %v457_v31  ;;  %v98_v8 = vmul.f32 %v443_v23, %v459_v32  ;;  %v113_v10 = vmul.f32 %v443_v23, %v461_v33  ;;  %v114_v13 = vmul.f32 %v443_v23, %v463_v34 }
  0x87   :  { %v95_v17 = vmul.f32 %v445_v24, %v457_v31  ;;  %v96_v20 = vmul.f32 %v445_v24, %v459_v32  ;;  %v111_v23 = vmul.f32 %v445_v24, %v461_v33  ;;  %v112_v27 = vmul.f32 %v445_v24, %v463_v34 }
  0x89   :  { %v453_v29 = vpop.permute.xlu1 %84  ;;  %v455_v30 = vpop.permute.xlu0 %79 }
  0x8a   :  { %v117_v24 = vmul.f32 %v453_v29, %v461_v33 }
  0x8d   :  { %v135_v39 = vpop.permute.xlu1 %134  ;;  %v130_v40 = vpop.permute.xlu0 %129 }
  0x8e   :  { %v169_v42 = vadd.f32 %v135_v39, %v89_v35  ;;  %v170_v43 = vadd.f32 %v135_v39, %v90_v36  ;;  %v185_v44 = vadd.f32 %v135_v39, %v105_v37  ;;  %v186_v46 = vadd.f32 %v135_v39, %v106_v38 }
  0x8f   :  { %v167_v48 = vadd.f32 %v130_v40, %v87_v41  ;;  %v168_v50 = vadd.f32 %v130_v40, %v88_v45  ;;  %v183_v53 = vadd.f32 %v130_v40, %v103_v47  ;;  %v184_v55 = vadd.f32 %v130_v40, %v104_v49 }
  0x90   :  { %285 = vtanh.f32 %v169_v42  ;;  %v101_v38 = vmul.f32 %v453_v29, %v457_v31  ;;  %v102_v41 = vmul.f32 %v453_v29, %v459_v32  ;;  %v118_v45 = vmul.f32 %v453_v29, %v463_v34 }
  0x91   :  { %287 = vtanh.f32 %v170_v43  ;;  %v145_v51 = vpop.permute.xlu1 %144  ;;  %v140_v60 = vpop.permute.xlu0 %139  ;;  %v115_v29 = vmul.f32 %v455_v30, %v461_v33 }
  0x92   :  { %289 = vtanh.f32 %v185_v44  ;;  %v173_v57 = vadd.f32 %v145_v51, %v93_v52  ;;  %v174_v59 = vadd.f32 %v145_v51, %v94_v54  ;;  %v189_v62 = vadd.f32 %v145_v51, %v109_v56 }
  0x93   :  { %291 = vtanh.f32 %v186_v46  ;;  %v190_v0 = vadd.f32 %v145_v51, %v110_v58  ;;  %v171_v2 = vadd.f32 %v140_v60, %v91_v61  ;;  %v172_v4 = vadd.f32 %v140_v60, %v92_v63 }
  0x94   :  { %293 = vtanh.f32 %v167_v48  ;;  %v187_v7 = vadd.f32 %v140_v60, %v107_v1  ;;  %v188_v9 = vadd.f32 %v140_v60, %v108_v3 }
  0x95   :  { %295 = vtanh.f32 %v168_v50  ;;  %v155_v5 = vpop.permute.xlu1 %154  ;;  %v150_v15 = vpop.permute.xlu0 %149  ;;  %v99_v50 = vmul.f32 %v455_v30, %v457_v31  ;;  %v116_v31 = vmul.f32 %v455_v30, %v463_v34 }
  0x96   :  { %297 = vtanh.f32 %v183_v53  ;;  %v177_v11 = vadd.f32 %v155_v5, %v97_v6  ;;  %v178_v14 = vadd.f32 %v155_v5, %v98_v8  ;;  %v193_v18 = vadd.f32 %v155_v5, %v113_v10 }
  0x97   :  { %299 = vtanh.f32 %v184_v55  ;;  %v194_v21 = vadd.f32 %v155_v5, %v114_v13  ;;  %v175_v25 = vadd.f32 %v150_v15, %v95_v17  ;;  %v176_v28 = vadd.f32 %v150_v15, %v96_v20 }
  0x98   :  { %301 = vtanh.f32 %v173_v57  ;;  %v191_v37 = vadd.f32 %v150_v15, %v111_v23  ;;  %v192_v40 = vadd.f32 %v150_v15, %v112_v27  ;;  %v100_v53 = vmul.f32 %v455_v30, %v459_v32 }
  0x99   :  { %303 = vtanh.f32 %v174_v59  ;;  %v165_v35 = vpop.permute.xlu1 %164  ;;  %v160_v47 = vpop.permute.xlu0 %159 }
  0x9a   :  { %305 = vtanh.f32 %v189_v62  ;;  %v181_v43 = vadd.f32 %v165_v35, %v101_v38  ;;  %v182_v46 = vadd.f32 %v165_v35, %v102_v41  ;;  %v197_v49 = vadd.f32 %v165_v35, %v117_v24 }
  0x9b   :  { %307 = vtanh.f32 %v190_v0  ;;  %v198_v52 = vadd.f32 %v165_v35, %v118_v45  ;;  %v179_v55 = vadd.f32 %v160_v47, %v99_v50  ;;  %v180_v57 = vadd.f32 %v160_v47, %v100_v53 }
  0x9c   :  { %309 = vtanh.f32 %v171_v2  ;;  %v195_v59 = vadd.f32 %v160_v47, %v115_v29  ;;  %v196_v32 = vadd.f32 %v160_v47, %v116_v31 }
  0x9d   :  { %v286_v12 = vpop.eup %285  ;;  %311 = vtanh.f32 %v172_v4 }
  0x9e   :  { %v288_v16 = vpop.eup %287  ;;  %233 = vst [vmem:[#allocation2 + $0x10] sm:$0xff] %v286_v12  ;;  %313 = vtanh.f32 %v187_v7 }
  0x9f   :  { %v290_v19 = vpop.eup %289  ;;  %234 = vst [vmem:[#allocation2 + $0x18] sm:$0xff] %v288_v16  ;;  %315 = vtanh.f32 %v188_v9 }
  0xa0   :  { %v292_v22 = vpop.eup %291  ;;  %249 = vst [vmem:[#allocation2 + $0x90] sm:$0xff] %v290_v19  ;;  %317 = vtanh.f32 %v177_v11 }
  0xa1   :  { %v294_v26 = vpop.eup %293  ;;  %250 = vst [vmem:[#allocation2 + $0x98] sm:$0xff] %v292_v22  ;;  %319 = vtanh.f32 %v178_v14 }
  0xa2   :  { %v296_v36 = vpop.eup %295  ;;  %231 = vst [vmem:[#allocation2] sm:$0xff] %v294_v26  ;;  %321 = vtanh.f32 %v193_v18 }
  0xa3   :  { %v298_v39 = vpop.eup %297  ;;  %232 = vst [vmem:[#allocation2 + $0x8] sm:$0xff] %v296_v36  ;;  %323 = vtanh.f32 %v194_v21 }
  0xa4   :  { %v300_v42 = vpop.eup %299  ;;  %247 = vst [vmem:[#allocation2 + $0x80] sm:$0xff] %v298_v39  ;;  %325 = vtanh.f32 %v175_v25 }
  0xa5   :  { %v302_v44 = vpop.eup %301  ;;  %248 = vst [vmem:[#allocation2 + $0x88] sm:$0xff] %v300_v42  ;;  %327 = vtanh.f32 %v176_v28 }
  0xa6   :  { %v304_v48 = vpop.eup %303  ;;  %237 = vst [vmem:[#allocation2 + $0x30] sm:$0xff] %v302_v44  ;;  %329 = vtanh.f32 %v191_v37 }
  0xa7   :  { %v306_v51 = vpop.eup %305  ;;  %238 = vst [vmem:[#allocation2 + $0x38] sm:$0xff] %v304_v48  ;;  %331 = vtanh.f32 %v192_v40 }
  0xa8   :  { %v308_v54 = vpop.eup %307  ;;  %253 = vst [vmem:[#allocation2 + $0xb0] sm:$0xff] %v306_v51  ;;  %333 = vtanh.f32 %v181_v43 }
  0xa9   :  { %v310_v56 = vpop.eup %309  ;;  %254 = vst [vmem:[#allocation2 + $0xb8] sm:$0xff] %v308_v54  ;;  %335 = vtanh.f32 %v182_v46 }
  0xaa   :  { %v312_v58 = vpop.eup %311  ;;  %235 = vst [vmem:[#allocation2 + $0x20] sm:$0xff] %v310_v56  ;;  %337 = vtanh.f32 %v197_v49 }
  0xab   :  { %v314_v60 = vpop.eup %313  ;;  %236 = vst [vmem:[#allocation2 + $0x28] sm:$0xff] %v312_v58  ;;  %339 = vtanh.f32 %v198_v52 }
  0xac   :  { %v316_v61 = vpop.eup %315  ;;  %251 = vst [vmem:[#allocation2 + $0xa0] sm:$0xff] %v314_v60  ;;  %341 = vtanh.f32 %v179_v55 }
  0xad   :  { %v318_v33 = vpop.eup %317  ;;  %252 = vst [vmem:[#allocation2 + $0xa8] sm:$0xff] %v316_v61  ;;  %343 = vtanh.f32 %v180_v57 }
  0xae   :  { %v320_v62 = vpop.eup %319  ;;  %241 = vst [vmem:[#allocation2 + $0x50] sm:$0xff] %v318_v33  ;;  %345 = vtanh.f32 %v195_v59 }
  0xaf   :  { %v322_v63 = vpop.eup %321  ;;  %242 = vst [vmem:[#allocation2 + $0x58] sm:$0xff] %v320_v62  ;;  %347 = vtanh.f32 %v196_v32 }
  0xb0   :  { %v324_v30 = vpop.eup %323  ;;  %257 = vst [vmem:[#allocation2 + $0xd0] sm:$0xff] %v322_v63 }
  0xb1   :  { %v326_v34 = vpop.eup %325  ;;  %258 = vst [vmem:[#allocation2 + $0xd8] sm:$0xff] %v324_v30 }
  0xb2   :  { %v328_v0 = vpop.eup %327  ;;  %239 = vst [vmem:[#allocation2 + $0x40] sm:$0xff] %v326_v34 }
  0xb3   :  { %v330_v1 = vpop.eup %329  ;;  %240 = vst [vmem:[#allocation2 + $0x48] sm:$0xff] %v328_v0 }
  0xb4   :  { %v332_v2 = vpop.eup %331  ;;  %255 = vst [vmem:[#allocation2 + $0xc0] sm:$0xff] %v330_v1 }
  0xb5   :  { %v334_v3 = vpop.eup %333  ;;  %256 = vst [vmem:[#allocation2 + $0xc8] sm:$0xff] %v332_v2 }
  0xb6   :  { %v336_v4 = vpop.eup %335  ;;  %245 = vst [vmem:[#allocation2 + $0x70] sm:$0xff] %v334_v3 }
  0xb7   :  { %v338_v5 = vpop.eup %337  ;;  %246 = vst [vmem:[#allocation2 + $0x78] sm:$0xff] %v336_v4 }
  0xb8   :  { %v340_v6 = vpop.eup %339  ;;  %261 = vst [vmem:[#allocation2 + $0xf0] sm:$0xff] %v338_v5 }
  0xb9   :  { %v342_v7 = vpop.eup %341  ;;  %262 = vst [vmem:[#allocation2 + $0xf8] sm:$0xff] %v340_v6 }
  0xba   :  { %v344_v8 = vpop.eup %343  ;;  %243 = vst [vmem:[#allocation2 + $0x60] sm:$0xff] %v342_v7 }
  0xbb   :  { %v346_v9 = vpop.eup %345  ;;  %244 = vst [vmem:[#allocation2 + $0x68] sm:$0xff] %v344_v8 }
  0xbc   :  { %v348_v10 = vpop.eup %347  ;;  %259 = vst [vmem:[#allocation2 + $0xe0] sm:$0xff] %v346_v9 }
  0xbd   :  { %260 = vst [vmem:[#allocation2 + $0xe8] sm:$0xff] %v348_v10 }
  0xbe   :  { %360 = shalt.err (!%p357_p4)
}
  0xbf   :  { %s373_s21 = smov 256   ;;  %s374_s22 = smov 16  }
  0xc0   :  { %274 = dma.vmem_to_hbm [thread:$0]  %s269_s19, 4096, %s519_s3, [#allocation3], %s373_s21, %s373_s21, %s374_s22  }
  0xc1   :  { %369 = dma.done.wait [#allocation3], 4096  }
  0xc2   :  { %370 = vsyncadd [#allocation3], 4294963200 }
  0xc3   :  { %278 = vsyncpa [#allocation3], 1 }

</bundles_post_ra>
